<compile_context>
chip_gen: v5e
topology: v5e:2x2
jax: 0.10.0
libtpu: 0.0.40
codegen_flags: <defaults>
</compile_context>

<pallas_src>
import jax
import jax.numpy as jnp
from jax.experimental import pallas as pl
from jax.experimental.pallas import tpu as pltpu

# ---- model hyperparameters (small, deterministic) ----
B, C_IN, L = 2, 4, 16        # batch, input channels, sequence length
K = 3                        # conv kernel size (padding=1 => "same" length)
H1, H2 = 16, 32              # encoder conv channels; H2 is the embedding dim
HC, NC = 32, 3               # classifier hidden width, number of classes
B_PAD = 8                    # sublane-padded batch rows used inside the kernel
NC_PAD = 128                 # lane-dense padded class dim used inside the kernel
BL = B * L


def _shift_prev(h):
    """Row r <- h[r-1]; zeroed where r is the first row of its sequence (t == 0)."""
    pos = jax.lax.broadcasted_iota(jnp.int32, h.shape, 0) % L
    rolled = pltpu.roll(h, 1, axis=0)
    return jnp.where(pos != 0, rolled, jnp.zeros_like(rolled))


def _shift_next(h):
    """Row r <- h[r+1]; zeroed where r is the last row of its sequence (t == L-1)."""
    pos = jax.lax.broadcasted_iota(jnp.int32, h.shape, 0) % L
    rolled = pltpu.roll(h, BL - 1, axis=0)   # rotate by -1, expressed as a non-negative shift
    return jnp.where(pos != L - 1, rolled, jnp.zeros_like(rolled))


def meta_model_ae_kernel(x_ref, pool_ref, w1_ref, b1_ref, w2_ref, b2_ref,
                         wc1_ref, bc1_ref, wc2_ref, bc2_ref, out_ref):
    """Fused encoder + classifier forward (roll/mask conv taps, no relayout chain).

    x_ref   : (B*L, C_IN)  f32   channels-last input rows (row r = b*L + t)
    pool_ref: (B_PAD, B*L) f32   averaging matrix (1/L baked in; rows >= B are zero)
    w1_ref  : (K, C_IN, H1) f32  conv1 taps;  b1_ref: (1, H1) f32
    w2_ref  : (K, H1,  H2) f32   conv2 taps;  b2_ref: (1, H2) f32
    wc1_ref : (H2, HC) f32,      bc1_ref: (1, HC) f32
    wc2_ref : (HC, NC_PAD) f32 (zero-padded cols),  bc2_ref: (1, NC_PAD) f32
    out_ref : (B_PAD, NC_PAD) f32  (only [:B, :NC] is meaningful)
    """
    f32 = jnp.float32

    # ---- conv1 (k=3, pad=1) + ReLU: three tap matmuls on rolled/masked rows ----
    x = x_ref[...]
    h1 = (jnp.dot(_shift_prev(x), w1_ref[0], preferred_element_type=f32)
          + jnp.dot(x,            w1_ref[1], preferred_element_type=f32)
          + jnp.dot(_shift_next(x), w1_ref[2], preferred_element_type=f32)
          + b1_ref[...])
    h1 = jnp.maximum(h1, 0.0)                                        # (B*L, H1)

    # ---- conv2 (k=3, pad=1) + ReLU ----
    h2 = (jnp.dot(_shift_prev(h1), w2_ref[0], preferred_element_type=f32)
          + jnp.dot(h1,            w2_ref[1], preferred_element_type=f32)
          + jnp.dot(_shift_next(h1), w2_ref[2], preferred_element_type=f32)
          + b2_ref[...])
    h2 = jnp.maximum(h2, 0.0)                                        # (B*L, H2)

    # ---- AdaptiveAvgPool1d(1) + squeeze(-1): mean over L via the averaging matmul,
    #      which also produces batch rows already padded to a full sublane tile ----
    x_enc = jnp.dot(pool_ref[...], h2, preferred_element_type=f32)   # (B_PAD, H2)

    # ---- classifier: Linear + ReLU + Linear (head lane-padded to 128) ----
    z = jnp.maximum(
        jnp.dot(x_enc, wc1_ref[...], preferred_element_type=f32) + bc1_ref[...], 0.0)
    out_ref[...] = (jnp.dot(z, wc2_ref[...], preferred_element_type=f32)
                    + bc2_ref[...])
    # final .squeeze(-1) on (B, NC=3) is a no-op (matches PyTorch semantics).


def _full_spec(shape):
    ndim = len(shape)
    return pl.BlockSpec(shape, lambda *_, n=ndim: (0,) * n)


def prepare_params(params):
    """One-time parameter prep (casts / padding / pooling matrix); off the per-call path."""
    f32 = jnp.float32
    # averaging-pool matrix: pool[b, b*L + t] = 1/L for b < B; rows b >= B are zero.
    pool = jnp.repeat(jnp.eye(B, dtype=f32), L, axis=1) / L              # (B, B*L)
    pool = jnp.concatenate([pool, jnp.zeros((B_PAD - B, BL), f32)], 0)   # (B_PAD, B*L)
    wc2p = jnp.zeros((HC, NC_PAD), f32).at[:, :NC].set(params["wc2"])
    bc2p = jnp.zeros((1, NC_PAD), f32).at[:, :NC].set(params["bc2"])
    return {
        "pool": pool,
        "w1": params["w1"].astype(f32), "b1": params["b1"].astype(f32),
        "w2": params["w2"].astype(f32), "b2": params["b2"].astype(f32),
        "wc1": params["wc1"].astype(f32), "bc1": params["bc1"].astype(f32),
        "wc2": wc2p, "bc2": bc2p,
    }


@jax.jit
def meta_model_ae_forward(x_ncl, prep):
    """x_ncl: (B, C_IN, L) float32, PyTorch NCL layout. prep: prepare_params() output."""
    if x_ncl.shape != (B, C_IN, L):   # shape guard: kernel hard-codes B and L
        raise ValueError(f"expected input shape {(B, C_IN, L)}, got {x_ncl.shape}")
    # Only per-call glue: NCL -> (B*L, C_IN) slab (fuses to one small copy under jit).
    x_flat = jnp.transpose(x_ncl, (0, 2, 1)).reshape(BL, C_IN)

    args = (x_flat, prep["pool"], prep["w1"], prep["b1"], prep["w2"], prep["b2"],
            prep["wc1"], prep["bc1"], prep["wc2"], prep["bc2"])

    out_pad = pl.pallas_call(
        meta_model_ae_kernel,
        out_shape=jax.ShapeDtypeStruct((B_PAD, NC_PAD), jnp.float32),
        grid=(1,),
        in_specs=[_full_spec(a.shape) for a in args],
        out_specs=_full_spec((B_PAD, NC_PAD)),
        compiler_params=pltpu.CompilerParams(dimension_semantics=("arbitrary",)),
    )(*args)
    # TODO(synk): at realistic batch sizes, tile B*L into row blocks on a leading
    # "parallel" grid axis so v7x's second TensorCore does useful work; at B*L=32
    # a single grid step is cheapest on every generation.
    return out_pad[:B, :NC]


def reference_forward(x_ncl, params):
    """Full-precision PyTorch-semantics reference (per-tap conv, mean-pool, f32 linears)."""
    hp = jax.lax.Precision.HIGHEST
    x = jnp.transpose(x_ncl, (0, 2, 1))                     # (B, L, C_IN)
    xp = jnp.pad(x, ((0, 0), (1, 1), (0, 0)))
    h1 = sum(jnp.einsum("blc,co->blo", xp[:, k:k + L, :], params["w1"][k], precision=hp)
             for k in range(K)) + params["b1"]
    h1 = jnp.maximum(h1, 0.0)
    h1p = jnp.pad(h1, ((0, 0), (1, 1), (0, 0)))
    h2 = sum(jnp.einsum("blc,co->blo", h1p[:, k:k + L, :], params["w2"][k], precision=hp)
             for k in range(K)) + params["b2"]
    h2 = jnp.maximum(h2, 0.0)
    x_enc = jnp.mean(h2, axis=1)                            # AdaptiveAvgPool1d(1)+squeeze
    z = jnp.maximum(jnp.dot(x_enc, params["wc1"], precision=hp) + params["bc1"], 0.0)
    return jnp.dot(z, params["wc2"], precision=hp) + params["bc2"]


def init_params(key):
    ks = jax.random.split(key, 8)
    s = 0.1
    return {
        "w1":  s * jax.random.normal(ks[0], (K, C_IN, H1), jnp.float32),
        "b1":  s * jax.random.normal(ks[1], (1, H1), jnp.float32),
        "w2":  s * jax.random.normal(ks[2], (K, H1, H2), jnp.float32),
        "b2":  s * jax.random.normal(ks[3], (1, H2), jnp.float32),
        "wc1": s * jax.random.normal(ks[4], (H2, HC), jnp.float32),
        "bc1": s * jax.random.normal(ks[5], (1, HC), jnp.float32),
        "wc2": s * jax.random.normal(ks[6], (HC, NC), jnp.float32),
        "bc2": s * jax.random.normal(ks[7], (1, NC), jnp.float32),
    }
    # TODO(synk): decoder weights exist in MetaModel_AE.__init__ but are never used in
    # forward(), so they are intentionally not materialized here.


if __name__ == "__main__":
    key = jax.random.PRNGKey(0)
    x = jax.random.normal(key, (B, C_IN, L), jnp.float32)    # PyTorch NCL input
    params = init_params(jax.random.PRNGKey(42))
    prep = prepare_params(params)                            # one-time prep, off the hot path

    out = jax.block_until_ready(meta_model_ae_forward(x, prep))
    ref = jax.block_until_ready(reference_forward(x, params))

    assert out.shape == (B, NC), out.shape
    max_err = float(jnp.max(jnp.abs(out - ref)))
    assert jnp.allclose(out, ref, atol=1e-2, rtol=1e-2), (max_err, out, ref)
    print("KERNEL_OK")
</pallas_src>

<mosaic_0001>
module attributes {stable_mosaic.version = 11 : i64} {
  func.func @meta_model_ae_kernel(%arg0: i32, %arg1: memref<32x4xf32, #tpu.memory_space<vmem>>, %arg2: memref<8x32xf32, #tpu.memory_space<vmem>>, %arg3: memref<3x4x16xf32, #tpu.memory_space<vmem>>, %arg4: memref<1x16xf32, #tpu.memory_space<vmem>>, %arg5: memref<3x16x32xf32, #tpu.memory_space<vmem>>, %arg6: memref<1x32xf32, #tpu.memory_space<vmem>>, %arg7: memref<32x32xf32, #tpu.memory_space<vmem>>, %arg8: memref<1x32xf32, #tpu.memory_space<vmem>>, %arg9: memref<32x128xf32, #tpu.memory_space<vmem>>, %arg10: memref<1x128xf32, #tpu.memory_space<vmem>>, %arg11: memref<8x128xf32, #tpu.memory_space<vmem>>) attributes {dimension_semantics = [#tpu.dimension_semantics<arbitrary>], iteration_bounds = array<i64: 1>, scalar_prefetch = 0 : i64, scratch_operands = 0 : i64, tpu.core_type = #tpu.core_type<tc>, window_params = [{pipeline_mode = #tpu.pipeline_mode<synchronous>, transform_indices = @transform_0, window_bounds = array<i64: 32, 4>}, {pipeline_mode = #tpu.pipeline_mode<synchronous>, transform_indices = @transform_1, window_bounds = array<i64: 8, 32>}, {pipeline_mode = #tpu.pipeline_mode<synchronous>, transform_indices = @transform_2, window_bounds = array<i64: 3, 4, 16>}, {pipeline_mode = #tpu.pipeline_mode<synchronous>, transform_indices = @transform_3, window_bounds = array<i64: 1, 16>}, {pipeline_mode = #tpu.pipeline_mode<synchronous>, transform_indices = @transform_4, window_bounds = array<i64: 3, 16, 32>}, {pipeline_mode = #tpu.pipeline_mode<synchronous>, transform_indices = @transform_5, window_bounds = array<i64: 1, 32>}, {pipeline_mode = #tpu.pipeline_mode<synchronous>, transform_indices = @transform_6, window_bounds = array<i64: 32, 32>}, {pipeline_mode = #tpu.pipeline_mode<synchronous>, transform_indices = @transform_7, window_bounds = array<i64: 1, 32>}, {pipeline_mode = #tpu.pipeline_mode<synchronous>, transform_indices = @transform_8, window_bounds = array<i64: 32, 128>}, {pipeline_mode = #tpu.pipeline_mode<synchronous>, transform_indices = @transform_9, window_bounds = array<i64: 1, 128>}, {pipeline_mode = #tpu.pipeline_mode<synchronous>, transform_indices = @transform_10, window_bounds = array<i64: 8, 128>}]} {
    %c0 = arith.constant 0 : index
    %c0_0 = arith.constant 0 : index
    %0 = vector.load %arg1[%c0, %c0_0] : memref<32x4xf32, #tpu.memory_space<vmem>>, vector<32x4xf32>
    %1 = tpu.iota {dimensions = array<i32: 0>} : vector<32x4xi32>
    %c16_i32 = arith.constant 16 : i32
    %c0_i32 = arith.constant 0 : i32
    %2 = arith.cmpi eq, %c16_i32, %c0_i32 : i32
    %c1_i32 = arith.constant 1 : i32
    %3 = arith.select %2, %c1_i32, %c16_i32 : i32
    %4 = vector.broadcast %3 : i32 to vector<32x4xi32>
    %5 = arith.remsi %1, %4 : vector<32x4xi32>
    %c0_i32_1 = arith.constant 0 : i32
    %6 = vector.broadcast %c0_i32_1 : i32 to vector<32x4xi32>
    %7 = arith.cmpi ne, %5, %6 : vector<32x4xi32>
    %c0_i32_2 = arith.constant 0 : i32
    %8 = vector.broadcast %c0_i32_2 : i32 to vector<32x4xi32>
    %9 = arith.cmpi slt, %5, %8 : vector<32x4xi32>
    %c0_i32_3 = arith.constant 0 : i32
    %10 = arith.cmpi slt, %3, %c0_i32_3 : i32
    %11 = vector.broadcast %10 : i1 to vector<32x4xi1>
    %12 = vector.broadcast %11 : vector<32x4xi1> to vector<32x4xi1>
    %13 = arith.xori %9, %12 : vector<32x4xi1>
    %14 = arith.andi %13, %7 : vector<32x4xi1>
    %15 = vector.broadcast %3 : i32 to vector<32x4xi32>
    %16 = arith.addi %5, %15 : vector<32x4xi32>
    %17 = arith.select %14, %16, %5 : vector<32x4xi1>, vector<32x4xi32>
    %c1_i32_4 = arith.constant 1 : i32
    %18 = tpu.dynamic_rotate %0 by %c1_i32_4 dim 0 : vector<32x4xf32>, i32 -> vector<32x4xf32>
    %c0_i32_5 = arith.constant 0 : i32
    %19 = vector.broadcast %c0_i32_5 : i32 to vector<32x4xi32>
    %20 = arith.cmpi ne, %17, %19 : vector<32x4xi32>
    %cst = arith.constant 0.000000e+00 : f32
    %21 = vector.broadcast %cst : f32 to vector<32x4xf32>
    %22 = arith.select %20, %18, %21 : vector<32x4xi1>, vector<32x4xf32>
    %c0_6 = arith.constant 0 : index
    %c0_7 = arith.constant 0 : index
    %c0_8 = arith.constant 0 : index
    %23 = vector.load %arg3[%c0_6, %c0_7, %c0_8] : memref<3x4x16xf32, #tpu.memory_space<vmem>>, vector<1x4x16xf32>
    %24 = vector.shape_cast %23 : vector<1x4x16xf32> to vector<4x16xf32>
    %cst_9 = arith.constant dense<0.000000e+00> : vector<32x16xf32>
    %25 = tpu.matmul %22, %24, %cst_9 {dimension_numbers = #tpu.dot_dimension_numbers<[1], [0], [0], [1], [0, 0, 1, 1], [], []>} : vector<32x4xf32>, vector<4x16xf32>, vector<32x16xf32> -> vector<32x16xf32>
    %c1 = arith.constant 1 : index
    %c0_10 = arith.constant 0 : index
    %c0_11 = arith.constant 0 : index
    %26 = vector.load %arg3[%c1, %c0_10, %c0_11] : memref<3x4x16xf32, #tpu.memory_space<vmem>>, vector<1x4x16xf32>
    %27 = vector.shape_cast %26 : vector<1x4x16xf32> to vector<4x16xf32>
    %cst_12 = arith.constant dense<0.000000e+00> : vector<32x16xf32>
    %28 = tpu.matmul %0, %27, %cst_12 {dimension_numbers = #tpu.dot_dimension_numbers<[1], [0], [0], [1], [0, 0, 1, 1], [], []>} : vector<32x4xf32>, vector<4x16xf32>, vector<32x16xf32> -> vector<32x16xf32>
    %29 = arith.addf %25, %28 : vector<32x16xf32>
    %30 = tpu.iota {dimensions = array<i32: 0>} : vector<32x4xi32>
    %c16_i32_13 = arith.constant 16 : i32
    %c0_i32_14 = arith.constant 0 : i32
    %31 = arith.cmpi eq, %c16_i32_13, %c0_i32_14 : i32
    %c1_i32_15 = arith.constant 1 : i32
    %32 = arith.select %31, %c1_i32_15, %c16_i32_13 : i32
    %33 = vector.broadcast %32 : i32 to vector<32x4xi32>
    %34 = arith.remsi %30, %33 : vector<32x4xi32>
    %c0_i32_16 = arith.constant 0 : i32
    %35 = vector.broadcast %c0_i32_16 : i32 to vector<32x4xi32>
    %36 = arith.cmpi ne, %34, %35 : vector<32x4xi32>
    %c0_i32_17 = arith.constant 0 : i32
    %37 = vector.broadcast %c0_i32_17 : i32 to vector<32x4xi32>
    %38 = arith.cmpi slt, %34, %37 : vector<32x4xi32>
    %c0_i32_18 = arith.constant 0 : i32
    %39 = arith.cmpi slt, %32, %c0_i32_18 : i32
    %40 = vector.broadcast %39 : i1 to vector<32x4xi1>
    %41 = vector.broadcast %40 : vector<32x4xi1> to vector<32x4xi1>
    %42 = arith.xori %38, %41 : vector<32x4xi1>
    %43 = arith.andi %42, %36 : vector<32x4xi1>
    %44 = vector.broadcast %32 : i32 to vector<32x4xi32>
    %45 = arith.addi %34, %44 : vector<32x4xi32>
    %46 = arith.select %43, %45, %34 : vector<32x4xi1>, vector<32x4xi32>
    %c31_i32 = arith.constant 31 : i32
    %47 = tpu.dynamic_rotate %0 by %c31_i32 dim 0 : vector<32x4xf32>, i32 -> vector<32x4xf32>
    %c15_i32 = arith.constant 15 : i32
    %48 = vector.broadcast %c15_i32 : i32 to vector<32x4xi32>
    %49 = arith.cmpi ne, %46, %48 : vector<32x4xi32>
    %cst_19 = arith.constant 0.000000e+00 : f32
    %50 = vector.broadcast %cst_19 : f32 to vector<32x4xf32>
    %51 = arith.select %49, %47, %50 : vector<32x4xi1>, vector<32x4xf32>
    %c2 = arith.constant 2 : index
    %c0_20 = arith.constant 0 : index
    %c0_21 = arith.constant 0 : index
    %52 = vector.load %arg3[%c2, %c0_20, %c0_21] : memref<3x4x16xf32, #tpu.memory_space<vmem>>, vector<1x4x16xf32>
    %53 = vector.shape_cast %52 : vector<1x4x16xf32> to vector<4x16xf32>
    %cst_22 = arith.constant dense<0.000000e+00> : vector<32x16xf32>
    %54 = tpu.matmul %51, %53, %cst_22 {dimension_numbers = #tpu.dot_dimension_numbers<[1], [0], [0], [1], [0, 0, 1, 1], [], []>} : vector<32x4xf32>, vector<4x16xf32>, vector<32x16xf32> -> vector<32x16xf32>
    %55 = arith.addf %29, %54 : vector<32x16xf32>
    %c0_23 = arith.constant 0 : index
    %c0_24 = arith.constant 0 : index
    %56 = vector.load %arg4[%c0_23, %c0_24] : memref<1x16xf32, #tpu.memory_space<vmem>>, vector<1x16xf32>
    %57 = vector.broadcast %56 : vector<1x16xf32> to vector<32x16xf32>
    %58 = arith.addf %55, %57 : vector<32x16xf32>
    %cst_25 = arith.constant 0.000000e+00 : f32
    %59 = vector.broadcast %cst_25 : f32 to vector<32x16xf32>
    %60 = arith.maximumf %58, %59 : vector<32x16xf32>
    %61 = tpu.iota {dimensions = array<i32: 0>} : vector<32x16xi32>
    %c16_i32_26 = arith.constant 16 : i32
    %c0_i32_27 = arith.constant 0 : i32
    %62 = arith.cmpi eq, %c16_i32_26, %c0_i32_27 : i32
    %c1_i32_28 = arith.constant 1 : i32
    %63 = arith.select %62, %c1_i32_28, %c16_i32_26 : i32
    %64 = vector.broadcast %63 : i32 to vector<32x16xi32>
    %65 = arith.remsi %61, %64 : vector<32x16xi32>
    %c0_i32_29 = arith.constant 0 : i32
    %66 = vector.broadcast %c0_i32_29 : i32 to vector<32x16xi32>
    %67 = arith.cmpi ne, %65, %66 : vector<32x16xi32>
    %c0_i32_30 = arith.constant 0 : i32
    %68 = vector.broadcast %c0_i32_30 : i32 to vector<32x16xi32>
    %69 = arith.cmpi slt, %65, %68 : vector<32x16xi32>
    %c0_i32_31 = arith.constant 0 : i32
    %70 = arith.cmpi slt, %63, %c0_i32_31 : i32
    %71 = vector.broadcast %70 : i1 to vector<32x16xi1>
    %72 = vector.broadcast %71 : vector<32x16xi1> to vector<32x16xi1>
    %73 = arith.xori %69, %72 : vector<32x16xi1>
    %74 = arith.andi %73, %67 : vector<32x16xi1>
    %75 = vector.broadcast %63 : i32 to vector<32x16xi32>
    %76 = arith.addi %65, %75 : vector<32x16xi32>
    %77 = arith.select %74, %76, %65 : vector<32x16xi1>, vector<32x16xi32>
    %c1_i32_32 = arith.constant 1 : i32
    %78 = tpu.dynamic_rotate %60 by %c1_i32_32 dim 0 : vector<32x16xf32>, i32 -> vector<32x16xf32>
    %c0_i32_33 = arith.constant 0 : i32
    %79 = vector.broadcast %c0_i32_33 : i32 to vector<32x16xi32>
    %80 = arith.cmpi ne, %77, %79 : vector<32x16xi32>
    %cst_34 = arith.constant 0.000000e+00 : f32
    %81 = vector.broadcast %cst_34 : f32 to vector<32x16xf32>
    %82 = arith.select %80, %78, %81 : vector<32x16xi1>, vector<32x16xf32>
    %c0_35 = arith.constant 0 : index
    %c0_36 = arith.constant 0 : index
    %c0_37 = arith.constant 0 : index
    %83 = vector.load %arg5[%c0_35, %c0_36, %c0_37] : memref<3x16x32xf32, #tpu.memory_space<vmem>>, vector<1x16x32xf32>
    %84 = vector.shape_cast %83 : vector<1x16x32xf32> to vector<16x32xf32>
    %cst_38 = arith.constant dense<0.000000e+00> : vector<32x32xf32>
    %85 = tpu.matmul %82, %84, %cst_38 {dimension_numbers = #tpu.dot_dimension_numbers<[1], [0], [0], [1], [0, 0, 1, 1], [], []>} : vector<32x16xf32>, vector<16x32xf32>, vector<32x32xf32> -> vector<32x32xf32>
    %c1_39 = arith.constant 1 : index
    %c0_40 = arith.constant 0 : index
    %c0_41 = arith.constant 0 : index
    %86 = vector.load %arg5[%c1_39, %c0_40, %c0_41] : memref<3x16x32xf32, #tpu.memory_space<vmem>>, vector<1x16x32xf32>
    %87 = vector.shape_cast %86 : vector<1x16x32xf32> to vector<16x32xf32>
    %cst_42 = arith.constant dense<0.000000e+00> : vector<32x32xf32>
    %88 = tpu.matmul %60, %87, %cst_42 {dimension_numbers = #tpu.dot_dimension_numbers<[1], [0], [0], [1], [0, 0, 1, 1], [], []>} : vector<32x16xf32>, vector<16x32xf32>, vector<32x32xf32> -> vector<32x32xf32>
    %89 = arith.addf %85, %88 : vector<32x32xf32>
    %90 = tpu.iota {dimensions = array<i32: 0>} : vector<32x16xi32>
    %c16_i32_43 = arith.constant 16 : i32
    %c0_i32_44 = arith.constant 0 : i32
    %91 = arith.cmpi eq, %c16_i32_43, %c0_i32_44 : i32
    %c1_i32_45 = arith.constant 1 : i32
    %92 = arith.select %91, %c1_i32_45, %c16_i32_43 : i32
    %93 = vector.broadcast %92 : i32 to vector<32x16xi32>
    %94 = arith.remsi %90, %93 : vector<32x16xi32>
    %c0_i32_46 = arith.constant 0 : i32
    %95 = vector.broadcast %c0_i32_46 : i32 to vector<32x16xi32>
    %96 = arith.cmpi ne, %94, %95 : vector<32x16xi32>
    %c0_i32_47 = arith.constant 0 : i32
    %97 = vector.broadcast %c0_i32_47 : i32 to vector<32x16xi32>
    %98 = arith.cmpi slt, %94, %97 : vector<32x16xi32>
    %c0_i32_48 = arith.constant 0 : i32
    %99 = arith.cmpi slt, %92, %c0_i32_48 : i32
    %100 = vector.broadcast %99 : i1 to vector<32x16xi1>
    %101 = vector.broadcast %100 : vector<32x16xi1> to vector<32x16xi1>
    %102 = arith.xori %98, %101 : vector<32x16xi1>
    %103 = arith.andi %102, %96 : vector<32x16xi1>
    %104 = vector.broadcast %92 : i32 to vector<32x16xi32>
    %105 = arith.addi %94, %104 : vector<32x16xi32>
    %106 = arith.select %103, %105, %94 : vector<32x16xi1>, vector<32x16xi32>
    %c31_i32_49 = arith.constant 31 : i32
    %107 = tpu.dynamic_rotate %60 by %c31_i32_49 dim 0 : vector<32x16xf32>, i32 -> vector<32x16xf32>
    %c15_i32_50 = arith.constant 15 : i32
    %108 = vector.broadcast %c15_i32_50 : i32 to vector<32x16xi32>
    %109 = arith.cmpi ne, %106, %108 : vector<32x16xi32>
    %cst_51 = arith.constant 0.000000e+00 : f32
    %110 = vector.broadcast %cst_51 : f32 to vector<32x16xf32>
    %111 = arith.select %109, %107, %110 : vector<32x16xi1>, vector<32x16xf32>
    %c2_52 = arith.constant 2 : index
    %c0_53 = arith.constant 0 : index
    %c0_54 = arith.constant 0 : index
    %112 = vector.load %arg5[%c2_52, %c0_53, %c0_54] : memref<3x16x32xf32, #tpu.memory_space<vmem>>, vector<1x16x32xf32>
    %113 = vector.shape_cast %112 : vector<1x16x32xf32> to vector<16x32xf32>
    %cst_55 = arith.constant dense<0.000000e+00> : vector<32x32xf32>
    %114 = tpu.matmul %111, %113, %cst_55 {dimension_numbers = #tpu.dot_dimension_numbers<[1], [0], [0], [1], [0, 0, 1, 1], [], []>} : vector<32x16xf32>, vector<16x32xf32>, vector<32x32xf32> -> vector<32x32xf32>
    %115 = arith.addf %89, %114 : vector<32x32xf32>
    %c0_56 = arith.constant 0 : index
    %c0_57 = arith.constant 0 : index
    %116 = vector.load %arg6[%c0_56, %c0_57] : memref<1x32xf32, #tpu.memory_space<vmem>>, vector<1x32xf32>
    %117 = vector.broadcast %116 : vector<1x32xf32> to vector<32x32xf32>
    %118 = arith.addf %115, %117 : vector<32x32xf32>
    %cst_58 = arith.constant 0.000000e+00 : f32
    %119 = vector.broadcast %cst_58 : f32 to vector<32x32xf32>
    %120 = arith.maximumf %118, %119 : vector<32x32xf32>
    %c0_59 = arith.constant 0 : index
    %c0_60 = arith.constant 0 : index
    %121 = vector.load %arg2[%c0_59, %c0_60] : memref<8x32xf32, #tpu.memory_space<vmem>>, vector<8x32xf32>
    %cst_61 = arith.constant dense<0.000000e+00> : vector<8x32xf32>
    %122 = tpu.matmul %121, %120, %cst_61 {dimension_numbers = #tpu.dot_dimension_numbers<[1], [0], [0], [1], [0, 0, 1, 1], [], []>} : vector<8x32xf32>, vector<32x32xf32>, vector<8x32xf32> -> vector<8x32xf32>
    %c0_62 = arith.constant 0 : index
    %c0_63 = arith.constant 0 : index
    %123 = vector.load %arg7[%c0_62, %c0_63] : memref<32x32xf32, #tpu.memory_space<vmem>>, vector<32x32xf32>
    %cst_64 = arith.constant dense<0.000000e+00> : vector<8x32xf32>
    %124 = tpu.matmul %122, %123, %cst_64 {dimension_numbers = #tpu.dot_dimension_numbers<[1], [0], [0], [1], [0, 0, 1, 1], [], []>} : vector<8x32xf32>, vector<32x32xf32>, vector<8x32xf32> -> vector<8x32xf32>
    %c0_65 = arith.constant 0 : index
    %c0_66 = arith.constant 0 : index
    %125 = vector.load %arg8[%c0_65, %c0_66] : memref<1x32xf32, #tpu.memory_space<vmem>>, vector<1x32xf32>
    %126 = vector.broadcast %125 : vector<1x32xf32> to vector<8x32xf32>
    %127 = arith.addf %124, %126 : vector<8x32xf32>
    %cst_67 = arith.constant 0.000000e+00 : f32
    %128 = vector.broadcast %cst_67 : f32 to vector<8x32xf32>
    %129 = arith.maximumf %127, %128 : vector<8x32xf32>
    %c0_68 = arith.constant 0 : index
    %c0_69 = arith.constant 0 : index
    %130 = vector.load %arg9[%c0_68, %c0_69] : memref<32x128xf32, #tpu.memory_space<vmem>>, vector<32x128xf32>
    %cst_70 = arith.constant dense<0.000000e+00> : vector<8x128xf32>
    %131 = tpu.matmul %129, %130, %cst_70 {dimension_numbers = #tpu.dot_dimension_numbers<[1], [0], [0], [1], [0, 0, 1, 1], [], []>} : vector<8x32xf32>, vector<32x128xf32>, vector<8x128xf32> -> vector<8x128xf32>
    %c0_71 = arith.constant 0 : index
    %c0_72 = arith.constant 0 : index
    %132 = vector.load %arg10[%c0_71, %c0_72] : memref<1x128xf32, #tpu.memory_space<vmem>>, vector<1x128xf32>
    %133 = vector.broadcast %132 : vector<1x128xf32> to vector<8x128xf32>
    %134 = arith.addf %131, %133 : vector<8x128xf32>
    %c0_73 = arith.constant 0 : index
    %c0_74 = arith.constant 0 : index
    %135 = vector.load %arg11[%c0_73, %c0_74] : memref<8x128xf32, #tpu.memory_space<vmem>>, vector<8x128xf32>
    tpu.vector_store %arg11[%c0_73, %c0_74], %134 {strides = array<i32>} : memref<8x128xf32, #tpu.memory_space<vmem>>, vector<8x128xf32>,
    return
  }
  func.func @transform_0(%arg0: i32) -> (i32, i32) {
    %c0_i32 = arith.constant 0 : i32
    %c0_i32_0 = arith.constant 0 : i32
    %c0_i32_1 = arith.constant 0 : i32
    return %c0_i32, %c0_i32_0 : i32, i32
  }
  func.func @transform_1(%arg0: i32) -> (i32, i32) {
    %c0_i32 = arith.constant 0 : i32
    %c0_i32_0 = arith.constant 0 : i32
    %c0_i32_1 = arith.constant 0 : i32
    return %c0_i32, %c0_i32_0 : i32, i32
  }
  func.func @transform_2(%arg0: i32) -> (i32, i32, i32) {
    %c0_i32 = arith.constant 0 : i32
    %c0_i32_0 = arith.constant 0 : i32
    %c0_i32_1 = arith.constant 0 : i32
    %c0_i32_2 = arith.constant 0 : i32
    return %c0_i32, %c0_i32_0, %c0_i32_1 : i32, i32, i32
  }
  func.func @transform_3(%arg0: i32) -> (i32, i32) {
    %c0_i32 = arith.constant 0 : i32
    %c0_i32_0 = arith.constant 0 : i32
    %c0_i32_1 = arith.constant 0 : i32
    return %c0_i32, %c0_i32_0 : i32, i32
  }
  func.func @transform_4(%arg0: i32) -> (i32, i32, i32) {
    %c0_i32 = arith.constant 0 : i32
    %c0_i32_0 = arith.constant 0 : i32
    %c0_i32_1 = arith.constant 0 : i32
    %c0_i32_2 = arith.constant 0 : i32
    return %c0_i32, %c0_i32_0, %c0_i32_1 : i32, i32, i32
  }
  func.func @transform_5(%arg0: i32) -> (i32, i32) {
    %c0_i32 = arith.constant 0 : i32
    %c0_i32_0 = arith.constant 0 : i32
    %c0_i32_1 = arith.constant 0 : i32
    return %c0_i32, %c0_i32_0 : i32, i32
  }
  func.func @transform_6(%arg0: i32) -> (i32, i32) {
    %c0_i32 = arith.constant 0 : i32
    %c0_i32_0 = arith.constant 0 : i32
    %c0_i32_1 = arith.constant 0 : i32
    return %c0_i32, %c0_i32_0 : i32, i32
  }
  func.func @transform_7(%arg0: i32) -> (i32, i32) {
    %c0_i32 = arith.constant 0 : i32
    %c0_i32_0 = arith.constant 0 : i32
    %c0_i32_1 = arith.constant 0 : i32
    return %c0_i32, %c0_i32_0 : i32, i32
  }
  func.func @transform_8(%arg0: i32) -> (i32, i32) {
    %c0_i32 = arith.constant 0 : i32
    %c0_i32_0 = arith.constant 0 : i32
    %c0_i32_1 = arith.constant 0 : i32
    return %c0_i32, %c0_i32_0 : i32, i32
  }
  func.func @transform_9(%arg0: i32) -> (i32, i32) {
    %c0_i32 = arith.constant 0 : i32
    %c0_i32_0 = arith.constant 0 : i32
    %c0_i32_1 = arith.constant 0 : i32
    return %c0_i32, %c0_i32_0 : i32, i32
  }
  func.func @transform_10(%arg0: i32) -> (i32, i32) {
    %c0_i32 = arith.constant 0 : i32
    %c0_i32_0 = arith.constant 0 : i32
    %c0_i32_1 = arith.constant 0 : i32
    return %c0_i32, %c0_i32_0 : i32, i32
  }
}

</mosaic_0001>

<bundles_post_ra>
// kernel: meta_model_ae_forward.1
= control target key start
LH: loop header
LB: loop body
LE: loop exit
PB: predicated region body
PF: predicated region fallthrough
CT: control target
= control target key end

     0   :  { %15 = vsyncpa [#allocation3], 0  ;;  %s1148_s0 = inlined_call_operand.vmem [shape: f32[32,4], index: 0, kind: input, shape index: {}]   ;;  %s1149_s1 = inlined_call_operand.hbm [shape: f32[8,32], index: 1, kind: input, shape index: {}]   ;;  %s1150_s2 = inlined_call_operand.hbm [shape: f32[3,4,16], index: 2, kind: input, shape index: {}]   ;;  %s1151_s3 = inlined_call_operand.hbm [shape: f32[1,16], index: 3, kind: input, shape index: {}]   ;;  %s1152_s4 = inlined_call_operand.vmem [shape: f32[3,16,32], index: 4, kind: input, shape index: {}]   ;;  %s1153_s5 = inlined_call_operand.hbm [shape: f32[1,32], index: 5, kind: input, shape index: {}]   ;;  %s1154_s6 = inlined_call_operand.hbm [shape: f32[32,32], index: 6, kind: input, shape index: {}]   ;;  %s1155_s7 = inlined_call_operand.hbm [shape: f32[1,32], index: 7, kind: input, shape index: {}]   ;;  %s1156_s8 = inlined_call_operand.hbm [shape: f32[32,128], index: 8, kind: input, shape index: {}]   ;;  %s1157_s9 = inlined_call_operand.hbm [shape: f32[1,128], index: 9, kind: input, shape index: {}]   ;;  %s1158_s10 = inlined_call_operand.vmem [shape: f32[8,128], index: 10, kind: output, shape index: {}]  }
   0x1   :  { %16 = vsyncpa [#allocation5], 0 }
   0x2   :  { %17 = vsyncpa [#allocation8], 0 }
   0x3   :  { %18 = vsyncpa [#allocation11], 0  ;;  %s37_s15 = sshll.u32 %s1150_s2, 4  ;;  %s38_s15 = int_to_ptr.hbm [resolvable:$true] %s37_s15 }
   0x4   :  { %19 = vsyncpa [#allocation14], 0  ;;  %s920_s16 = smov [#allocation4]   ;;  %s64_s20 = sshll.u32 %s1153_s5, 4  ;;  %s65_s20 = int_to_ptr.hbm [resolvable:$true] %s64_s20 }
   0x5   :  { %s39_s17 = sshll.u32 %s920_s16, 4  ;;  %s921_s21 = smov 64   ;;  %s40_s17 = int_to_ptr.vmem [resolvable:$true] %s39_s17 }
   0x6   :  { %s922_s22 = smov 4   ;;  %s923_s23 = smov [#allocation7]  }
   0x7   :  { %45 = dma.hbm_to_vmem [thread:$0]  %s38_s15, 192, %s40_s17, [#allocation5], %s921_s21, %s921_s21, %s922_s22  }
   0x8   :  { %s66_s24 = sshll.u32 %s923_s23, 4  ;;  %s88_s27 = sshll.u32 %s1155_s7, 4  ;;  %s67_s24 = int_to_ptr.vmem [resolvable:$true] %s66_s24  ;;  %s89_s27 = int_to_ptr.hbm [resolvable:$true] %s88_s27 }
   0x9   :  { %69 = dma.hbm_to_vmem [thread:$0]  %s65_s20, 16, %s67_s24, [#allocation8]  }
   0xa   :  { %s27_s29 = sshll.u32 %s1149_s1, 4  ;;  %s924_s30 = smov [#allocation10]   ;;  %s28_s29 = int_to_ptr.hbm [resolvable:$true] %s27_s29 }
   0xb   :  { %s90_s11 = sshll.u32 %s924_s30, 4  ;;  %s925_s5 = smov [#allocation2]   ;;  %s91_s11 = int_to_ptr.vmem [resolvable:$true] %s90_s11 }
   0xc   :  { %93 = dma.hbm_to_vmem [thread:$0]  %s89_s27, 16, %s91_s11, [#allocation11]  }
   0xd   :  { %s29_s12 = sshll.u32 %s925_s5, 4  ;;  %s51_s15 = sshll.u32 %s1151_s3, 4  ;;  %s30_s12 = int_to_ptr.vmem [resolvable:$true] %s29_s12  ;;  %s52_s15 = int_to_ptr.hbm [resolvable:$true] %s51_s15 }
   0xe   :  { %32 = dma.hbm_to_vmem [thread:$0]  %s28_s29, 128, %s30_s12, [#allocation3]  }
   0xf   :  { %s74_s17 = sshll.u32 %s1154_s6, 4  ;;  %s926_s18 = smov [#allocation6]   ;;  %s75_s17 = int_to_ptr.hbm [resolvable:$true] %s74_s17 }
  0x10   :  { %s53_s1 = sshll.u32 %s926_s18, 4  ;;  %s927_s19 = smov [#allocation9]   ;;  %s54_s1 = int_to_ptr.vmem [resolvable:$true] %s53_s1 }
  0x11   :  { %56 = dma.hbm_to_vmem [thread:$0]  %s52_s15, 16, %s54_s1, [#allocation5]  }
  0x12   :  { %s76_s20 = sshll.u32 %s927_s19, 4  ;;  %s928_s21 = smov 128   ;;  %s77_s20 = int_to_ptr.vmem [resolvable:$true] %s76_s20 }
  0x13   :  { %s929_s22 = smov 8   ;;  %s98_s24 = sshll.u32 %s1156_s8, 4  ;;  %s99_s24 = int_to_ptr.hbm [resolvable:$true] %s98_s24 }
  0x14   :  { %82 = dma.hbm_to_vmem [thread:$0]  %s75_s17, 512, %s77_s20, [#allocation8], %s928_s21, %s928_s21, %s929_s22  }
  0x15   :  { %s930_s25 = smov [#allocation12]   ;;  %s112_s2 = sshll.u32 %s1157_s9, 4  ;;  %s113_s2 = int_to_ptr.hbm [resolvable:$true] %s112_s2 }
  0x16   :  { %s100_s26 = sshll.u32 %s930_s25, 4  ;;  %s931_s28 = smov [#allocation13]   ;;  %s101_s26 = int_to_ptr.vmem [resolvable:$true] %s100_s26 }
  0x17   :  { %106 = dma.hbm_to_vmem [thread:$0]  %s99_s24, 512, %s101_s26, [#allocation11], %s928_s21, %s928_s21, %s929_s22  }
  0x18   :  { %s114_s29 = sshll.u32 %s931_s28, 4  ;;  %s115_s29 = int_to_ptr.vmem [resolvable:$true] %s114_s29 }
  0x19   :  { %117 = dma.hbm_to_vmem [thread:$0]  %s113_s2, 16, %s115_s29, [#allocation14]  }
  0x1a   :  { %910 = dma.done.wait [#allocation3], 128  }
  0x1b   :  { %911 = vsyncadd [#allocation3], 4294967168 }
  0x1c   :  { %912 = dma.done.wait [#allocation5], 208  }
  0x1d   :  { %913 = vsyncadd [#allocation5], 4294967088 }
  0x1e   :  { %914 = dma.done.wait [#allocation8], 528  }
  0x1f   :  { %915 = vsyncadd [#allocation8], 4294966768 }
  0x20   :  { %916 = dma.done.wait [#allocation11], 528  }
  0x21   :  { %917 = vsyncadd [#allocation11], 4294966768 }
  0x22   :  { %918 = dma.done.wait [#allocation14], 16  }
  0x23   :  { %919 = vsyncadd [#allocation14], 4294967280  ;;  %v154_v0 = vlaneseq  ;;  %vm240_vm0 = vcmask 1043456   ;;  %vm227_vm1 = vcmask 31744   ;;  %v226_v3 = vld [vmem:[#allocation4 + $0x4] sm:$0xf] }
  0x24   :  { %v224_v4 = vld [vmem:[#allocation4] sm:$0xf]  ;;  %v153_v5 = vld [vmem:[%s1148_s0 + $0x18] sm:$0xff]  ;;  %700 = vmatpush.msk.msra.mxu3 %vm240_vm0, %v226_v3  ;;  %v152_v7 = vld [vmem:[%s1148_s0 + $0x10] sm:$0xff]  ;;  %666 = vmatpush.msk.msra.mxu0 %vm240_vm0, %v226_v3  ;;  %vm413_vm8 = vcmask 130048   ;;  %vm569_vm9 = vcmask 261120  }
  0x25   :  { %v1011_v1 = vshrl.u32 %v154_v0, 7  ;;  %701 = vmatpush.msk.msra.mxu2 %vm240_vm0, %v224_v4  ;;  %v210_v6 = vrot.slane %v153_v5, 7  ;;  %v335_v8 = vld [vmem:[#allocation4 + $0x8] sm:$0xf]  ;;  %v150_v9 = vld [vmem:[%s1148_s0] sm:$0xff]  ;;  %670 = vmatmul.msk.f32.vlgmr.msra.gmra.mxu3 %vm227_vm1, %v153_v5  ;;  %v209_v10 = vrot.slane %v152_v7, 7 }
  0x26   :  { %v207_v11 = vrot.slane %v150_v9, 7  ;;  %v151_v13 = vld [vmem:[%s1148_s0 + $0x8] sm:$0xff]  ;;  %671 = vmatpush.msk.msra.mxu1 %vm240_vm0, %v224_v4  ;;  %667 = vmatmul.msk.f32.vlgmr.msra.gmra.mxu0 %vm227_vm1, %v150_v9  ;;  %v317_v17 = vrot.slane %v150_v9, 1  ;;  %v319_v24 = vrot.slane %v152_v7, 1  ;;  %v320_v33 = vrot.slane %v153_v5, 1  ;;  %v682_v40 = vld [vmem:[%s1152_s4 + $0x18] sm:$0xff] }
  0x27   :  { %v163_v2 = vand.u32 15, %v1011_v1  ;;  %vm211_vm2 = vcmp.lt.s32.totalorder %v1011_v1, 1  ;;  %676 = vmatpush.msk.msrb.mxu2 %vm240_vm0, %v335_v8  ;;  %v318_v18 = vrot.slane %v151_v13, 1  ;;  %vm321_vm4 = vcmp.lt.s32.totalorder %v1011_v1, 7  ;;  %440 = vmatpush.msrb.mxu3 %v682_v40  ;;  %v681_v41 = vld [vmem:[%s1152_s4 + $0x10] sm:$0xff]  ;;  %v692_v42 = vld [vmem:[%s1152_s4 + $0x28] sm:$0xff] }
  0x28   :  { %v212_v14 = vsel %vm211_vm2, %v209_v10, %v210_v6  ;;  %v215_v15 = vsel %vm211_vm2, %v210_v6, %v207_v11  ;;  %v156_v19 = vadd.s32 8, %v1011_v1  ;;  %v208_v20 = vrot.slane %v151_v13, 7  ;;  %537 = vmatpush.msrb.mxu1 %v692_v42  ;;  %v691_v43 = vld [vmem:[%s1152_s4 + $0x20] sm:$0xff]  ;;  %v714_v48 = vld [vmem:[#allocation6] ss:$0 sm:$0xff]  ;;  %v409_v50 = vld [vmem:[%s1152_s4 + $0x8] sm:$0xff] }
  0x29   :  { %vm1028_vm3 = vcmp.ne.s32.totalorder %v163_v2, 0  ;;  %675 = vmatmul.msk.f32.vlgmr.msra.gmra.mxu2 %vm227_vm1, %v212_v14  ;;  %v157_v21 = vadd.s32 16, %v1011_v1  ;;  %v324_v22 = vsel %vm321_vm4, %v317_v17, %v318_v18  ;;  %v323_v27 = vsel %vm321_vm4, %v318_v18, %v319_v24  ;;  %441 = vmatpush.msrb.mxu3 %v681_v41  ;;  %v408_v51 = vld [vmem:[%s1152_s4] sm:$0xff]  ;;  %v595_v40 = vld [vmem:[#allocation9 + $0x10] sm:$0xff]  ;;  %v593_v30 = vld [vmem:[#allocation9] sm:$0xff] }
  0x2a   :  { %v220_v16 = vsel %vm1028_vm3, %v215_v15, 0.0  ;;  %v170_v23 = vand.u32 15, %v156_v19  ;;  %v214_v25 = vsel %vm211_vm2, %v207_v11, %v208_v20  ;;  %v213_v29 = vsel %vm211_vm2, %v208_v20, %v209_v10  ;;  %538 = vmatpush.msrb.mxu1 %v691_v43  ;;  %481 = vmatpush.msrb.mxu0 %v409_v50  ;;  %v594_v41 = vld [vmem:[#allocation9 + $0x8] sm:$0xff] }
  0x2b   :  { %672 = vmatmul.msk.f32.vlgmr.msra.gmra.mxu1 %vm227_vm1, %v220_v16  ;;  %v177_v26 = vand.u32 15, %v157_v21  ;;  %v158_v34 = vadd.s32 24, %v1011_v1  ;;  %v322_v35 = vsel %vm321_vm4, %v319_v24, %v320_v33  ;;  %v325_v37 = vsel %vm321_vm4, %v320_v33, %v317_v17 }
  0x2c   :  { %vm1058_vm5 = vcmp.ne.s32.totalorder %v170_v23, 15  ;;  %482 = vmatpush.msrb.mxu0 %v408_v51 }
  0x2d   :  { %vm1064_vm6 = vcmp.ne.s32.totalorder %v177_v26, 0  ;;  %v331_v31 = vsel %vm1058_vm5, %v323_v27, 0.0  ;;  %v184_v36 = vand.u32 15, %v158_v34 }
  0x2e   :  { %668 = vmatmul.msk.f32.gmra.mxu0 %vm227_vm1, %v151_v13  ;;  %v222_v32 = vsel %vm1064_vm6, %v213_v29, 0.0 }
  0x2f   :  { %vm1081_vm7 = vcmp.ne.s32.totalorder %v184_v36, 15 }
  0x30   :  { %v333_v39 = vsel %vm1081_vm7, %v325_v37, 0.0 }
  0x31   :  { %677 = vmatmul.msk.f32.vlgmr.msrb.gmra.mxu2 %vm227_vm1, %v324_v22 }
  0x33   :  { %673 = vmatmul.msk.f32.gmra.mxu1 %vm227_vm1, %v214_v25 }
  0x36   :  { %669 = vmatmul.msk.f32.gmra.mxu0 %vm227_vm1, %v152_v7 }
  0x39   :  { %678 = vmatmul.msk.f32.gmra.mxu2 %vm227_vm1, %v331_v31 }
  0x3b   :  { %674 = vmatmul.msk.f32.gmra.mxu1 %vm227_vm1, %v222_v32 }
  0x41   :  { %679 = vmatmul.msk.f32.gmra.mxu2 %vm227_vm1, %v322_v35 }
  0x49   :  { %680 = vmatmul.msk.f32.gmra.mxu2 %vm227_vm1, %v333_v39  ;;  %v596_v39 = vld [vmem:[#allocation9 + $0x18] sm:$0xff] }
  0x4a   :  { %616 = vmatpush.msra.mxu3 %v596_v39 }
  0x4c   :  { %617 = vmatpush.msra.mxu3 %v595_v40 }
  0x4e   :  { %618 = vmatpush.msra.mxu3 %v594_v41 }
  0x50   :  { %619 = vmatpush.msra.mxu3 %v593_v30 }
  0xa3   :  { %v261_v44 = vpop.f32.mrf.mxu0 }
  0xa8   :  { %v305_v45 = vpop.f32.mrf.mxu1  ;;  %v270_v8 = vpop.f32.mrf.mxu3 }
  0xa9   :  { %v306_v47 = vadd.f32 %v305_v45, %v261_v44 }
  0xab   :  { %v264_v49 = vpop.f32.mrf.mxu0 }
  0xac   :  { %v314_v46 = vpop.f32.mrf.mxu2 }
  0xad   :  { %v315_v10 = vadd.f32 %v314_v46, %v270_v8 }
  0xb0   :  { %v308_v53 = vpop.f32.mrf.mxu1 }
  0xb1   :  { %v309_v57 = vadd.f32 %v308_v53, %v264_v49 }
  0xb3   :  { %v267_v60 = vpop.f32.mrf.mxu0 }
  0xb4   :  { %v368_v52 = vpop.f32.mrf.mxu2 }
  0xb5   :  { %v380_v54 = vadd.f32 %v368_v52, %v306_v47 }
  0xb7   :  { %v388_v55 = vadd.f32 %v714_v48, %v380_v54  ;;  %v715_v54 = vld [vmem:[#allocation7] ss:$0 sm:$0xff] }
  0xb8   :  { %v311_v61 = vpop.f32.mrf.mxu1 }
  0xb9   :  { %v392_v56 = vmax.f32 %v388_v55, 0.0  ;;  %v312_v0 = vadd.f32 %v311_v61, %v267_v60 }
  0xbb   :  { %683 = vmatmul.msk.f32.vlgmr.msrb.gmra.mxu3 %vm413_vm8, %v392_v56  ;;  %v496_v2 = vrot.slane %v392_v56, 1  ;;  %v396_v19 = vrot.slane %v392_v56, 7 }
  0xbc   :  { %v371_v58 = vpop.f32.mrf.mxu2 }
  0xbd   :  { %v381_v59 = vadd.f32 %v371_v58, %v309_v57 }
  0xbf   :  { %v389_v62 = vadd.f32 %v714_v48, %v381_v59 }
  0xc1   :  { %v393_v63 = vmax.f32 %v389_v62, 0.0 }
  0xc3   :  { %v497_v3 = vrot.slane %v393_v63, 1  ;;  %684 = vmatmul.msk.f32.gmra.mxu3 %vm413_vm8, %v393_v63  ;;  %v397_v25 = vrot.slane %v393_v63, 7 }
  0xc4   :  { %v374_v4 = vpop.f32.mrf.mxu2 }
  0xc5   :  { %v382_v5 = vadd.f32 %v374_v4, %v312_v0  ;;  %v502_v6 = vsel %vm321_vm4, %v496_v2, %v497_v3  ;;  %v402_v27 = vsel %vm211_vm2, %v396_v19, %v397_v25  ;;  %v568_v0 = vld [vmem:[#allocation2] sm:$0xff] }
  0xc6   :  { %693 = vmatmul.msk.f32.vlgmr.msrb.gmra.mxu1 %vm413_vm8, %v502_v6  ;;  %v625_v6 = vld [vmem:[#allocation12] sm:$0xff] }
  0xc7   :  { %v390_v7 = vadd.f32 %v714_v48, %v382_v5  ;;  %v626_v5 = vld [vmem:[#allocation12 + $0x8] sm:$0xff] }
  0xc9   :  { %v394_v9 = vmax.f32 %v390_v7, 0.0  ;;  %v716_v7 = vld [vmem:[#allocation10] ss:$0 sm:$0xff] }
  0xcb   :  { %685 = vmatmul.msk.f32.gmra.mxu3 %vm413_vm8, %v394_v9  ;;  %v498_v11 = vrot.slane %v394_v9, 1  ;;  %v398_v12 = vrot.slane %v394_v9, 7 }
  0xcc   :  { %v377_v13 = vpop.f32.mrf.mxu2 }
  0xcd   :  { %v383_v14 = vadd.f32 %v377_v13, %v315_v10  ;;  %v501_v15 = vsel %vm321_vm4, %v497_v3, %v498_v11  ;;  %v401_v29 = vsel %vm211_vm2, %v397_v25, %v398_v12  ;;  %v627_v3 = vld [vmem:[#allocation12 + $0x10] sm:$0xff] }
  0xce   :  { %v505_v16 = vsel %vm1058_vm5, %v501_v15, 0.0  ;;  %v406_v31 = vsel %vm1064_vm6, %v401_v29, 0.0 }
  0xcf   :  { %v391_v17 = vadd.f32 %v714_v48, %v383_v14  ;;  %694 = vmatmul.msk.f32.gmra.mxu1 %vm413_vm8, %v505_v16 }
  0xd1   :  { %v395_v18 = vmax.f32 %v391_v17, 0.0 }
  0xd3   :  { %v399_v20 = vrot.slane %v395_v18, 7  ;;  %686 = vmatmul.msk.f32.gmra.mxu3 %vm413_vm8, %v395_v18  ;;  %v499_v21 = vrot.slane %v395_v18, 1 }
  0xd5   :  { %v403_v22 = vsel %vm211_vm2, %v399_v20, %v396_v19  ;;  %v500_v23 = vsel %vm321_vm4, %v498_v11, %v499_v21  ;;  %v503_v26 = vsel %vm321_vm4, %v499_v21, %v496_v2  ;;  %v400_v32 = vsel %vm211_vm2, %v398_v12, %v399_v20  ;;  %v628_v2 = vld [vmem:[#allocation12 + $0x18] sm:$0xff]  ;;  %v717_v11 = vld [vmem:[#allocation13] ss:$0 sm:$0xff] }
  0xd6   :  { %v404_v24 = vsel %vm1028_vm3, %v403_v22, 0.0  ;;  %v507_v28 = vsel %vm1081_vm7, %v503_v26, 0.0 }
  0xd7   :  { %687 = vmatmul.msk.f32.vlgmr.msrb.gmra.mxu0 %vm413_vm8, %v404_v24  ;;  %695 = vmatmul.msk.f32.gmra.mxu1 %vm413_vm8, %v500_v23 }
  0xdf   :  { %688 = vmatmul.msk.f32.gmra.mxu0 %vm413_vm8, %v402_v27  ;;  %696 = vmatmul.msk.f32.gmra.mxu1 %vm413_vm8, %v507_v28 }
  0xe7   :  { %689 = vmatmul.msk.f32.gmra.mxu0 %vm413_vm8, %v406_v31 }
  0xef   :  { %690 = vmatmul.msk.f32.gmra.mxu0 %vm413_vm8, %v400_v32 }
 0x13e   :  { %v443_v33 = vpop.f32.mrf.mxu3 }
 0x143   :  { %v540_v34 = vpop.f32.mrf.mxu1 }
 0x146   :  { %v446_v36 = vpop.f32.mrf.mxu3 }
 0x14c   :  { %v543_v37 = vpop.f32.mrf.mxu1 }
 0x14e   :  { %v449_v42 = vpop.f32.mrf.mxu3 }
 0x154   :  { %v484_v35 = vpop.f32.mrf.mxu0  ;;  %v546_v43 = vpop.f32.mrf.mxu1 }
 0x155   :  { %v485_v48 = vadd.f32 %v484_v35, %v443_v33 }
 0x156   :  { %v452_v46 = vpop.f32.mrf.mxu3 }
 0x157   :  { %v552_v55 = vadd.f32 %v540_v34, %v485_v48 }
 0x159   :  { %v560_v61 = vadd.f32 %v715_v54, %v552_v55 }
 0x15b   :  { %v564_v63 = vmax.f32 %v560_v61, 0.0 }
 0x15c   :  { %v487_v38 = vpop.f32.mrf.mxu0  ;;  %v549_v51 = vpop.f32.mrf.mxu1 }
 0x15d   :  { %v488_v45 = vadd.f32 %v487_v38, %v446_v36 }
 0x15f   :  { %v553_v52 = vadd.f32 %v543_v37, %v488_v45 }
 0x161   :  { %v561_v59 = vadd.f32 %v715_v54, %v553_v52 }
 0x163   :  { %v565_v62 = vmax.f32 %v561_v59, 0.0 }
 0x164   :  { %v490_v1 = vpop.f32.mrf.mxu0 }
 0x165   :  { %v491_v44 = vadd.f32 %v490_v1, %v449_v42 }
 0x167   :  { %v554_v49 = vadd.f32 %v546_v43, %v491_v44 }
 0x169   :  { %v562_v57 = vadd.f32 %v715_v54, %v554_v49 }
 0x16b   :  { %v566_v60 = vmax.f32 %v562_v57, 0.0 }
 0x16c   :  { %v493_v47 = vpop.f32.mrf.mxu0 }
 0x16d   :  { %v494_v50 = vadd.f32 %v493_v47, %v452_v46 }
 0x16f   :  { %v555_v53 = vadd.f32 %v549_v51, %v494_v50 }
 0x171   :  { %v563_v56 = vadd.f32 %v715_v54, %v555_v53 }
 0x173   :  { %v567_v58 = vmax.f32 %v563_v56, 0.0 }
 0x175   :  { %585 = vmatpush.msra.mxu2 %v567_v58 }
 0x177   :  { %586 = vmatpush.msra.mxu2 %v566_v60 }
 0x179   :  { %587 = vmatpush.msra.mxu2 %v565_v62 }
 0x17b   :  { %588 = vmatpush.msra.mxu2 %v564_v63 }
 0x17c   :  { %697 = vmatmul.msk.f32.vlgmr.msra.gmra.mxu2 %vm569_vm9, %v568_v0 }
 0x17d   :  { %648 = vmatpush.msrb.mxu2 %v628_v2 }
 0x17f   :  { %649 = vmatpush.msrb.mxu2 %v627_v3 }
 0x181   :  { %650 = vmatpush.msrb.mxu2 %v626_v5 }
 0x183   :  { %651 = vmatpush.msrb.mxu2 %v625_v6 }
 0x1ff   :  { %v590_v4 = vpop.f32.mrf.mxu2 }
 0x200   :  { %698 = vmatmul.msk.f32.vlgmr.msra.gmra.mxu3 %vm569_vm9, %v590_v4 }
 0x283   :  { %v621_v8 = vpop.f32.mrf.mxu3 }
 0x284   :  { %v622_v9 = vadd.f32 %v716_v7, %v621_v8 }
 0x286   :  { %v624_v10 = vmax.f32 %v622_v9, 0.0 }
 0x288   :  { %699 = vmatmul.msk.f32.vlgmr.msrb.gmra.mxu2 %vm569_vm9, %v624_v10 }
 0x30b   :  { %v653_v13 = vpop.f32.mrf.mxu2 }
 0x30c   :  { %v654_v14 = vadd.f32 %v717_v11, %v653_v13 }
 0x30e   :  { %656 = vst [vmem:[%s1158_s10] sm:$0xff] %v654_v14 }
 0x30f   :  { %661 = vsyncpa [#allocation3], 1 }
 0x310   :  { %662 = vsyncpa [#allocation5], 1 }
 0x311   :  { %663 = vsyncpa [#allocation8], 1 }
 0x312   :  { %664 = vsyncpa [#allocation11], 1 }
 0x313   :  { %665 = vsyncpa [#allocation14], 1 }

</bundles_post_ra>
